<compile_context>
chip_gen: v7x
topology: tpu7x:2x2x1
jax: 0.10.0
libtpu: 0.0.40
codegen_flags: <defaults>
</compile_context>

<pallas_src>
import functools

import jax
import jax.numpy as jnp
from jax.experimental import pallas as pl
from jax.experimental.pallas import tpu as pltpu

VMEM_SPEC = pl.BlockSpec(memory_space=pltpu.MemorySpace.VMEM)


def _default_vmem_limit():
    """~75% of physical VMEM (v5e/v6e: 96 MiB, v7x: 48 MiB) so the compiler keeps
    headroom for its own scratch / semaphores."""
    try:
        info = pltpu.get_tpu_info()
        cap = int(getattr(info, "vmem_capacity_bytes", 64 * 1024 * 1024))
    except Exception:
        cap = 64 * 1024 * 1024
    return max(32 * 1024 * 1024, (cap * 3) // 4)


VMEM_LIMIT = _default_vmem_limit()


def _pick(dim, target, align):
    """Largest tile <= target that divides dim and is a multiple of align; falls
    back to the full dim for small shapes (full-dim blocks are always legal)."""
    if dim <= target:
        return dim
    t = (target // align) * align
    while t >= align:
        if dim % t == 0:
            return t
        t -= align
    # TODO(synk): pathologically unaligned large dim -> full-dim block; pad/mask if this triggers at scale.
    return dim


def _gelu(x):
    # TODO(synk): HF RoBERTa default is exact (erf) GELU; tanh approximation used for robust TPU lowering.
    return jax.nn.gelu(x, approximate=True)


# ------------- tiled matmul with fused bias / activation / residual / LayerNorm epilogue -------------
def _mm_kernel(x_ref, w_ref, b_ref, *rest, act, has_res, has_ln, eps):
    idx = 0
    res_ref = None
    g_ref = be_ref = None
    if has_res:
        res_ref = rest[idx]
        idx += 1
    if has_ln:
        g_ref, be_ref = rest[idx], rest[idx + 1]
        idx += 2
    o_ref, acc_ref = rest[idx], rest[idx + 1]

    k = pl.program_id(2)

    @pl.when(k == 0)
    def _():
        acc_ref[...] = jnp.zeros_like(acc_ref)

    acc_ref[...] += jnp.dot(x_ref[...], w_ref[...], preferred_element_type=jnp.float32)

    @pl.when(k == pl.num_programs(2) - 1)
    def _():
        y = acc_ref[...] + b_ref[...]
        if act == "gelu":
            y = _gelu(y)
        if has_res:
            y = y + res_ref[...].astype(jnp.float32)      # residual streamed bf16
        if has_ln:
            mu = jnp.mean(y, axis=-1, keepdims=True)
            var = jnp.mean((y - mu) ** 2, axis=-1, keepdims=True)
            y = (y - mu) * jax.lax.rsqrt(var + eps) * g_ref[...] + be_ref[...]
        o_ref[...] = y.astype(o_ref.dtype)


def linear(x, w, b, act="none", residual=None, ln=None, eps=1e-5,
           out_dtype=jnp.bfloat16):
    """out = epilogue(x @ w + b); epilogue = [act] -> [+residual] -> [LayerNorm].
    bf16 operand streaming, f32 accumulation/epilogue, bf16 output by default."""
    M, K = x.shape
    N = w.shape[1]
    has_res = residual is not None
    has_ln = ln is not None

    if has_ln:
        # LayerNorm epilogue needs the whole hidden row resident -> one N tile;
        # bound tm so the epilogue store burst stays modest (v5e: 1 vst slot).
        tm, tn = _pick(M, 512, 8), N
    else:
        tm, tn = _pick(M, 1024, 8), _pick(N, 1024, 128)
    tk = _pick(K, 512, 128)

    in_specs = [
        pl.BlockSpec((tm, tk), lambda i, j, k: (i, k)),
        pl.BlockSpec((tk, tn), lambda i, j, k: (k, j)),
        pl.BlockSpec((1, tn), lambda i, j, k: (0, j)),
    ]
    args = [x.astype(jnp.bfloat16), w.astype(jnp.bfloat16),
            b.reshape(1, N).astype(jnp.float32)]
    if has_res:
        in_specs.append(pl.BlockSpec((tm, tn), lambda i, j, k: (i, j)))
        args.append(residual.astype(jnp.bfloat16))         # no-op cast in the hot path
    if has_ln:
        g, be = ln
        in_specs += [pl.BlockSpec((1, tn), lambda i, j, k: (0, j)),
                     pl.BlockSpec((1, tn), lambda i, j, k: (0, j))]
        args += [g.reshape(1, N).astype(jnp.float32),
                 be.reshape(1, N).astype(jnp.float32)]

    return pl.pallas_call(
        functools.partial(_mm_kernel, act=act, has_res=has_res, has_ln=has_ln, eps=eps),
        out_shape=jax.ShapeDtypeStruct((M, N), out_dtype),
        grid=(M // tm, N // tn, K // tk),
        in_specs=in_specs,
        out_specs=pl.BlockSpec((tm, tn), lambda i, j, k: (i, j)),
        scratch_shapes=[pltpu.VMEM((tm, tn), jnp.float32)],
        compiler_params=pltpu.CompilerParams(
            dimension_semantics=("parallel", "parallel", "arbitrary"),
            vmem_limit_bytes=VMEM_LIMIT),
    )(*args)


# ----------------- embeddings: (word + pos + token-type) sum fused into LayerNorm -----------------
def _emb_ln_kernel(we_ref, pe_ref, tt_ref, g_ref, b_ref, o_ref, *, eps):
    x = we_ref[...] + pe_ref[...] + tt_ref[...]
    mu = jnp.mean(x, axis=-1, keepdims=True)
    var = jnp.mean((x - mu) ** 2, axis=-1, keepdims=True)
    o_ref[...] = ((x - mu) * jax.lax.rsqrt(var + eps) * g_ref[...] + b_ref[...]
                  ).astype(o_ref.dtype)


def emb_layernorm(we, pe, tt, gamma, beta, eps=1e-5):
    M, H = we.shape
    tm = _pick(M, 512, 8)
    return pl.pallas_call(
        functools.partial(_emb_ln_kernel, eps=eps),
        out_shape=jax.ShapeDtypeStruct((M, H), jnp.bfloat16),
        grid=(M // tm,),
        in_specs=[pl.BlockSpec((tm, H), lambda i: (i, 0)),
                  pl.BlockSpec((tm, H), lambda i: (i, 0)),
                  pl.BlockSpec((1, H), lambda i: (0, 0)),
                  pl.BlockSpec((1, H), lambda i: (0, 0)),
                  pl.BlockSpec((1, H), lambda i: (0, 0))],
        out_specs=pl.BlockSpec((tm, H), lambda i: (i, 0)),
        compiler_params=pltpu.CompilerParams(
            dimension_semantics=("parallel",),
            vmem_limit_bytes=VMEM_LIMIT),
    )(we, pe, tt.reshape(1, H), gamma.reshape(1, H), beta.reshape(1, H))


# ----------------- self-attention core: ALL heads of one batch per grid step -----------------
def _attn_kernel(q_ref, kt_ref, v_ref, bias_ref, o_ref):
    q = q_ref[0]          # (nH, S, dH) bf16, 1/sqrt(dH) already folded into Q weights
    kt = kt_ref[0]        # (nH, dH, S) bf16, pre-transposed in glue
    v = v_ref[0]          # (nH, S, dH) bf16
    s = jnp.einsum("hqd,hdk->hqk", q, kt, preferred_element_type=jnp.float32)
    s = s + bias_ref[...]                               # (1,1,S) broadcasts over heads/rows
    m = jnp.max(s, axis=-1, keepdims=True)
    p = jnp.exp(s - m)
    p = p * pl.reciprocal(jnp.sum(p, axis=-1, keepdims=True), approx=True)
    o_ref[0] = jnp.einsum("hqk,hkd->hqd", p.astype(v.dtype), v,
                          preferred_element_type=jnp.float32).astype(o_ref.dtype)


def attention(q, kt, v, bias):
    """q/v: (B, nH, S, dH) bf16;  kt: (B, nH, dH, S) bf16;  bias: (B, 1, S) f32."""
    B, nH, S, dH = q.shape
    return pl.pallas_call(
        _attn_kernel,
        out_shape=jax.ShapeDtypeStruct((B, nH, S, dH), jnp.bfloat16),
        grid=(B,),
        in_specs=[pl.BlockSpec((1, nH, S, dH), lambda b: (b, 0, 0, 0)),
                  pl.BlockSpec((1, nH, dH, S), lambda b: (b, 0, 0, 0)),
                  pl.BlockSpec((1, nH, S, dH), lambda b: (b, 0, 0, 0)),
                  pl.BlockSpec((1, 1, S), lambda b: (b, 0, 0))],
        out_specs=pl.BlockSpec((1, nH, S, dH), lambda b: (b, 0, 0, 0)),
        compiler_params=pltpu.CompilerParams(
            dimension_semantics=("parallel",),
            vmem_limit_bytes=VMEM_LIMIT),
    )(q, kt, v, bias)


# ----------------- fused head: losses + softmax + L1-norm + weighted combine -----------------
def _head_kernel(lm_ref, knn_ref, lab_ref, loss_ref, out_ref, *, lm_weight):
    lm = lm_ref[...]     # (B, L) raw label-word logits (f32)
    knn = knn_ref[...]   # (B, L) raw knn logits (f32)
    B, L = lm.shape

    # KnnModel: torch.nn.functional.normalize(p=1, dim=-1)
    knn_n = knn / jnp.maximum(jnp.sum(jnp.abs(knn), axis=-1, keepdims=True), 1e-12)

    lab = lab_ref[...]   # (B, 1) int32
    onehot = (jax.lax.broadcasted_iota(jnp.int32, (B, L), 1) == lab).astype(jnp.float32)

    def ce_mean(logits):  # nn.CrossEntropyLoss(reduction='mean')
        m = jnp.max(logits, axis=-1, keepdims=True)
        lse = m + jnp.log(jnp.sum(jnp.exp(logits - m), axis=-1, keepdims=True))
        picked = jnp.sum(logits * onehot, axis=-1, keepdims=True)
        return jnp.sum(lse - picked, axis=0, keepdims=True) / float(B)  # (1,1)

    knn_loss = ce_mean(knn_n)
    lm_loss = ce_mean(lm)

    # returned probabilities use an exact divide (parity with torch.softmax)
    m = jnp.max(lm, axis=-1, keepdims=True)
    e = jnp.exp(lm - m)
    lm_probs = e / jnp.sum(e, axis=-1, keepdims=True)

    loss_ref[...] = knn_loss + lm_loss
    out_ref[...] = lm_probs * lm_weight + knn_n * (1.0 - lm_weight)


def combine_heads(lm_logits, knn_logits, labels, lm_weight):
    B, L = lm_logits.shape
    # TODO(synk): L (num_labels) is tiny -> masked partial stores; pad to 128 lanes if L grows.
    loss, combined = pl.pallas_call(
        functools.partial(_head_kernel, lm_weight=float(lm_weight)),
        out_shape=(jax.ShapeDtypeStruct((1, 1), jnp.float32),
                   jax.ShapeDtypeStruct((B, L), jnp.float32)),
        in_specs=[VMEM_SPEC] * 3,
        out_specs=(VMEM_SPEC, VMEM_SPEC),
    )(lm_logits.astype(jnp.float32), knn_logits.astype(jnp.float32),
      labels.reshape(B, 1).astype(jnp.int32))
    return loss[0, 0], combined


# ----------------- parameters: deterministic synthetic init + one-time prep -----------------
def make_params(key, cfg):
    """Raw PyTorch-layout weights, all f32."""
    V, H, I, NL, P = cfg["vocab"], cfg["hidden"], cfg["intermediate"], cfg["layers"], cfg["max_pos"]
    keys = iter(jax.random.split(key, 256))

    def nrm(shape):
        return 0.02 * jax.random.normal(next(keys), shape, jnp.float32)

    p = {
        "word_emb": nrm((V, H)),
        "pos_emb": nrm((P, H)),
        "tt_emb": nrm((1, H)),
        "emb_ln_g": jnp.ones((H,), jnp.float32),
        "emb_ln_b": jnp.zeros((H,), jnp.float32),
        "layers": [],
        "lm_dense_w": nrm((H, H)),
        "lm_dense_b": jnp.zeros((H,), jnp.float32),
        "lm_ln_g": jnp.ones((H,), jnp.float32),
        "lm_ln_b": jnp.zeros((H,), jnp.float32),
        "lm_dec_w": nrm((H, V)),
        "lm_dec_b": jnp.zeros((V,), jnp.float32),
    }
    for _ in range(NL):
        p["layers"].append({
            "q_w": nrm((H, H)), "q_b": jnp.zeros((H,), jnp.float32),
            "k_w": nrm((H, H)), "k_b": jnp.zeros((H,), jnp.float32),
            "v_w": nrm((H, H)), "v_b": jnp.zeros((H,), jnp.float32),
            "o_w": nrm((H, H)), "o_b": jnp.zeros((H,), jnp.float32),
            "ln1_g": jnp.ones((H,), jnp.float32), "ln1_b": jnp.zeros((H,), jnp.float32),
            "fi_w": nrm((H, I)), "fi_b": jnp.zeros((I,), jnp.float32),
            "fo_w": nrm((I, H)), "fo_b": jnp.zeros((H,), jnp.float32),
            "ln2_g": jnp.ones((H,), jnp.float32), "ln2_b": jnp.zeros((H,), jnp.float32),
        })
    return p


def prep_params(p, cfg):
    """One-time prep (outside the forward): fuse QKV, fold the 1/sqrt(dH) scale
    into Q, cast matmul weights to bf16. Biases / LN params / embeddings stay f32."""
    H, nH = cfg["hidden"], cfg["heads"]
    scale = 1.0 / float(H // nH) ** 0.5
    out = {
        "word_emb": p["word_emb"], "pos_emb": p["pos_emb"], "tt_emb": p["tt_emb"],
        "emb_ln_g": p["emb_ln_g"], "emb_ln_b": p["emb_ln_b"],
        "lm_dense_w": p["lm_dense_w"].astype(jnp.bfloat16), "lm_dense_b": p["lm_dense_b"],
        "lm_ln_g": p["lm_ln_g"], "lm_ln_b": p["lm_ln_b"],
        "lm_dec_w": p["lm_dec_w"], "lm_dec_b": p["lm_dec_b"],
        "layers": [],
    }
    for lyr in p["layers"]:
        out["layers"].append({
            "wqkv": jnp.concatenate([lyr["q_w"] * scale, lyr["k_w"], lyr["v_w"]],
                                    axis=1).astype(jnp.bfloat16),
            "bqkv": jnp.concatenate([lyr["q_b"] * scale, lyr["k_b"], lyr["v_b"]], axis=0),
            "o_w": lyr["o_w"].astype(jnp.bfloat16), "o_b": lyr["o_b"],
            "ln1_g": lyr["ln1_g"], "ln1_b": lyr["ln1_b"],
            "fi_w": lyr["fi_w"].astype(jnp.bfloat16), "fi_b": lyr["fi_b"],
            "fo_w": lyr["fo_w"].astype(jnp.bfloat16), "fo_b": lyr["fo_b"],
            "ln2_g": lyr["ln2_g"], "ln2_b": lyr["ln2_b"],
        })
    return out


# ----------------- full forward (glue + Pallas kernels) -----------------
def knn_and_roberta_forward(params, cfg, knn_logits, input_ids, attention_mask,
                            mask_pos, labels, label_word_list, lm_weight):
    B, S = input_ids.shape
    H, nH = cfg["hidden"], cfg["heads"]
    dH = H // nH
    pad_id = 1  # RoBERTa padding_idx

    # --- RobertaModel embeddings: gathers are glue; sum+LayerNorm fused in one kernel ---
    we = jnp.take(params["word_emb"], input_ids, axis=0).reshape(B * S, H)
    not_pad = (input_ids != pad_id).astype(jnp.int32)
    pos_ids = jnp.cumsum(not_pad, axis=1) * not_pad + pad_id                 # HF position ids
    pe = jnp.take(params["pos_emb"], pos_ids, axis=0).reshape(B * S, H)
    x = emb_layernorm(we, pe, params["tt_emb"],
                      params["emb_ln_g"], params["emb_ln_b"])                # (B*S, H) bf16

    # additive attention-mask bias, kept per-batch (shared across heads inside the kernel)
    bias = ((1.0 - attention_mask.astype(jnp.float32)) * -1e9).reshape(B, 1, S)

    def split_heads(t):  # (B*S, H) -> (B, nH, S, dH), bf16 glue transpose
        return t.reshape(B, S, nH, dH).transpose(0, 2, 1, 3)

    for lyr in params["layers"]:
        # fused QKV projection: one matmul against prepped [H, 3H] bf16 weight
        qkv = linear(x, lyr["wqkv"], lyr["bqkv"])                            # (B*S, 3H) bf16
        q, k, v = jnp.split(qkv, 3, axis=-1)

        ctx = attention(split_heads(q),
                        split_heads(k).transpose(0, 1, 3, 2),                # K pre-transposed
                        split_heads(v), bias)                                # (B, nH, S, dH) bf16
        ctx = ctx.transpose(0, 2, 1, 3).reshape(B * S, H)                    # bf16 merge

        # attention output projection + residual + LayerNorm (fused epilogue)
        x = linear(ctx, lyr["o_w"], lyr["o_b"], residual=x,
                   ln=(lyr["ln1_g"], lyr["ln1_b"]))
        # FFN: in-projection + GELU (fused), out-projection + residual + LayerNorm (fused)
        ffn = linear(x, lyr["fi_w"], lyr["fi_b"], act="gelu")
        x = linear(ffn, lyr["fo_w"], lyr["fo_b"], residual=x,
                   ln=(lyr["ln2_g"], lyr["ln2_b"]))

    seq_out = x.reshape(B, S, H)
    seq_mask_out = seq_out[jnp.arange(B), mask_pos]                          # (B, H) bf16

    # --- RobertaLMHead: dense -> gelu -> LayerNorm (fused) -> decoder restricted to label words ---
    h = linear(seq_mask_out, params["lm_dense_w"], params["lm_dense_b"],
               act="gelu", ln=(params["lm_ln_g"], params["lm_ln_b"]))
    dec_w = params["lm_dec_w"][:, label_word_list]                           # (H, num_labels)
    dec_b = params["lm_dec_b"][label_word_list]                              # (num_labels,)
    lm_logits = linear(h, dec_w, dec_b, out_dtype=jnp.float32)               # (B, num_labels) f32

    # --- fused: knn L1-normalize, CE losses (lm + knn), softmax, weighted combine ---
    loss, combined = combine_heads(lm_logits, knn_logits, labels, lm_weight)
    return loss, combined


if __name__ == "__main__":
    cfg = dict(vocab=64, hidden=32, heads=2, layers=2, intermediate=64,
               max_pos=32, num_labels=4)
    key = jax.random.PRNGKey(0)
    kp, ki, kk = jax.random.split(key, 3)
    params = prep_params(make_params(kp, cfg), cfg)   # one-time weight prep (outside forward)

    B, S, L = 2, 8, cfg["num_labels"]
    input_ids = jax.random.randint(ki, (B, S), 2, cfg["vocab"], dtype=jnp.int32)
    attention_mask = jnp.ones((B, S), jnp.float32)
    mask_pos = jnp.array([3, 5], jnp.int32)
    labels = jnp.array([1, 3], jnp.int32)
    knn_logits = jax.random.uniform(kk, (B, L), jnp.float32)
    label_word_list = jnp.array([3, 17, 29, 41], jnp.int32)
    lm_weight = 0.7

    loss, combined = knn_and_roberta_forward(
        params, cfg, knn_logits, input_ids, attention_mask,
        mask_pos, labels, label_word_list, lm_weight)
    jax.block_until_ready((loss, combined))
    assert combined.shape == (B, L)
    print("KERNEL_OK")
</pallas_src>

<mosaic_0001>
module attributes {stable_mosaic.version = 11 : i64} {
  func.func @_emb_ln_kernel(%arg0: i32, %arg1: memref<16x32xf32, #tpu.memory_space<vmem>>, %arg2: memref<16x32xf32, #tpu.memory_space<vmem>>, %arg3: memref<1x32xf32, #tpu.memory_space<vmem>>, %arg4: memref<1x32xf32, #tpu.memory_space<vmem>>, %arg5: memref<1x32xf32, #tpu.memory_space<vmem>>, %arg6: memref<16x32xbf16, #tpu.memory_space<vmem>>) attributes {dimension_semantics = [#tpu.dimension_semantics<parallel>], iteration_bounds = array<i64: 1>, scalar_prefetch = 0 : i64, scratch_operands = 0 : i64, tpu.core_type = #tpu.core_type<tc>, window_params = [{transform_indices = @transform_0, window_bounds = array<i64: 16, 32>}, {transform_indices = @transform_1, window_bounds = array<i64: 16, 32>}, {pipeline_mode = #tpu.pipeline_mode<synchronous>, transform_indices = @transform_2, window_bounds = array<i64: 1, 32>}, {pipeline_mode = #tpu.pipeline_mode<synchronous>, transform_indices = @transform_3, window_bounds = array<i64: 1, 32>}, {pipeline_mode = #tpu.pipeline_mode<synchronous>, transform_indices = @transform_4, window_bounds = array<i64: 1, 32>}, {transform_indices = @transform_5, window_bounds = array<i64: 16, 32>}]} {
    %c0 = arith.constant 0 : index
    %c0_0 = arith.constant 0 : index
    %0 = vector.load %arg1[%c0, %c0_0] : memref<16x32xf32, #tpu.memory_space<vmem>>, vector<16x32xf32>
    %c0_1 = arith.constant 0 : index
    %c0_2 = arith.constant 0 : index
    %1 = vector.load %arg2[%c0_1, %c0_2] : memref<16x32xf32, #tpu.memory_space<vmem>>, vector<16x32xf32>
    %2 = arith.addf %0, %1 : vector<16x32xf32>
    %c0_3 = arith.constant 0 : index
    %c0_4 = arith.constant 0 : index
    %3 = vector.load %arg3[%c0_3, %c0_4] : memref<1x32xf32, #tpu.memory_space<vmem>>, vector<1x32xf32>
    %4 = vector.broadcast %3 : vector<1x32xf32> to vector<16x32xf32>
    %5 = arith.addf %2, %4 : vector<16x32xf32>
    %cst = arith.constant dense<0.000000e+00> : vector<16xf32>
    %6 = vector.multi_reduction <add>, %5, %cst [1] : vector<16x32xf32> to vector<16xf32>
    %7 = vector.shape_cast %6 : vector<16xf32> to vector<16x1xf32>
    %cst_5 = arith.constant 3.200000e+01 : f32
    %8 = vector.broadcast %cst_5 : f32 to vector<16x1xf32>
    %9 = arith.divf %7, %8 : vector<16x1xf32>
    %10 = vector.broadcast %9 : vector<16x1xf32> to vector<16x32xf32>
    %11 = arith.subf %5, %10 : vector<16x32xf32>
    %12 = arith.mulf %11, %11 : vector<16x32xf32>
    %cst_6 = arith.constant dense<0.000000e+00> : vector<16xf32>
    %13 = vector.multi_reduction <add>, %12, %cst_6 [1] : vector<16x32xf32> to vector<16xf32>
    %14 = vector.shape_cast %13 : vector<16xf32> to vector<16x1xf32>
    %cst_7 = arith.constant 3.200000e+01 : f32
    %15 = vector.broadcast %cst_7 : f32 to vector<16x1xf32>
    %16 = arith.divf %14, %15 : vector<16x1xf32>
    %17 = vector.broadcast %9 : vector<16x1xf32> to vector<16x32xf32>
    %18 = arith.subf %5, %17 : vector<16x32xf32>
    %cst_8 = arith.constant 9.99999974E-6 : f32
    %19 = vector.broadcast %cst_8 : f32 to vector<16x1xf32>
    %20 = arith.addf %16, %19 : vector<16x1xf32>
    %21 = math.rsqrt %20 : vector<16x1xf32>
    %22 = vector.broadcast %21 : vector<16x1xf32> to vector<16x32xf32>
    %23 = arith.mulf %18, %22 : vector<16x32xf32>
    %c0_9 = arith.constant 0 : index
    %c0_10 = arith.constant 0 : index
    %24 = vector.load %arg4[%c0_9, %c0_10] : memref<1x32xf32, #tpu.memory_space<vmem>>, vector<1x32xf32>
    %25 = vector.broadcast %24 : vector<1x32xf32> to vector<16x32xf32>
    %26 = arith.mulf %23, %25 : vector<16x32xf32>
    %c0_11 = arith.constant 0 : index
    %c0_12 = arith.constant 0 : index
    %27 = vector.load %arg5[%c0_11, %c0_12] : memref<1x32xf32, #tpu.memory_space<vmem>>, vector<1x32xf32>
    %28 = vector.broadcast %27 : vector<1x32xf32> to vector<16x32xf32>
    %29 = arith.addf %26, %28 : vector<16x32xf32>
    %30 = arith.truncf %29 : vector<16x32xf32> to vector<16x32xbf16>
    %c0_13 = arith.constant 0 : index
    %c0_14 = arith.constant 0 : index
    %31 = vector.load %arg6[%c0_13, %c0_14] : memref<16x32xbf16, #tpu.memory_space<vmem>>, vector<16x32xbf16>
    tpu.vector_store %arg6[%c0_13, %c0_14], %30 {strides = array<i32>} : memref<16x32xbf16, #tpu.memory_space<vmem>>, vector<16x32xbf16>,
    return
  }
  func.func @transform_0(%arg0: i32) -> (i32, i32) {
    %c0_i32 = arith.constant 0 : i32
    %c0_i32_0 = arith.constant 0 : i32
    return %arg0, %c0_i32 : i32, i32
  }
  func.func @transform_1(%arg0: i32) -> (i32, i32) {
    %c0_i32 = arith.constant 0 : i32
    %c0_i32_0 = arith.constant 0 : i32
    return %arg0, %c0_i32 : i32, i32
  }
  func.func @transform_2(%arg0: i32) -> (i32, i32) {
    %c0_i32 = arith.constant 0 : i32
    %c0_i32_0 = arith.constant 0 : i32
    %c0_i32_1 = arith.constant 0 : i32
    return %c0_i32, %c0_i32_0 : i32, i32
  }
  func.func @transform_3(%arg0: i32) -> (i32, i32) {
    %c0_i32 = arith.constant 0 : i32
    %c0_i32_0 = arith.constant 0 : i32
    %c0_i32_1 = arith.constant 0 : i32
    return %c0_i32, %c0_i32_0 : i32, i32
  }
  func.func @transform_4(%arg0: i32) -> (i32, i32) {
    %c0_i32 = arith.constant 0 : i32
    %c0_i32_0 = arith.constant 0 : i32
    %c0_i32_1 = arith.constant 0 : i32
    return %c0_i32, %c0_i32_0 : i32, i32
  }
  func.func @transform_5(%arg0: i32) -> (i32, i32) {
    %c0_i32 = arith.constant 0 : i32
    %c0_i32_0 = arith.constant 0 : i32
    return %arg0, %c0_i32 : i32, i32
  }
}

</mosaic_0001>

<bundles_post_ra>
// kernel: tpu_custom_call.1
= control target key start
LH: loop header
LB: loop body
LE: loop exit
PB: predicated region body
PF: predicated region fallthrough
CT: control target
= control target key end

     0   :  { %10 = vsyncpa [#allocation3], 0  ;;  %s315_s0 = inlined_call_operand.hbm [shape: f32[16,32], index: 0, kind: input, shape index: {}]   ;;  %s316_s1 = inlined_call_operand.hbm [shape: f32[16,32], index: 1, kind: input, shape index: {}]   ;;  %s317_s2 = inlined_call_operand.vmem [shape: f32[1,32], index: 2, kind: input, shape index: {}]   ;;  %s318_s3 = inlined_call_operand.vmem [shape: f32[1,32], index: 3, kind: input, shape index: {}]   ;;  %s319_s4 = inlined_call_operand.vmem [shape: f32[1,32], index: 4, kind: input, shape index: {}]   ;;  %s320_s5 = inlined_call_operand.hbm [shape: bf16[16,32], index: 5, kind: output, shape index: {}]  }
   0x1   :  { %11 = vsyncpa [#allocation6], 0 }
   0x2   :  { %12 = vsyncpa [#allocation4], 0  ;;  %s229_s18 = smov [#allocation2]   ;;  %s157_s22 = scalar_lea.hbm %s315_s0, 256 }
   0x3   :  { %s18_s19 = sshll.u32 %s229_s18, 4  ;;  %p158_p0 = scmp.ne.s32.totalorder %s315_s0, %s157_s22  ;;  %s19_s19 = int_to_ptr.vmem [resolvable:$true] %s18_s19 }
   0x4   :  { %p161_p1 = scmp.lt.u32.totalorder %s157_s22, %s315_s0 }
   0x6   :  { %p163_p2 = pnand %p161_p1, %p158_p0 }
   0x8   :  { %166 = shalt.err (!%p163_p2)
}
   0x9   :  { %s167_s27 = scalar_lea.vmem %s19_s19, 256  ;;  %p172_p4 = scmp.lt.s32.totalorder %s19_s19, %s19_s19 }
   0xa   :  { %p168_p3 = scmp.ne.s32.totalorder %s19_s19, %s167_s27  ;;  %p173_p5 = scmp.lt.s32.totalorder %s167_s27, %s167_s27 }
   0xc   :  { %p174_p6 = por %p173_p5, %p172_p4 }
   0xe   :  { %p175_p7 = pnand %p174_p6, %p168_p3 }
  0x10   :  { %178 = shalt.err (!%p175_p7)
}
  0x11   :  { %s230_s28 = smov 128   ;;  %s231_s29 = smov 8  }
  0x12   :  { %24 = dma.hbm_to_vmem [thread:$0]  %s315_s0, 256, %s19_s19, [#allocation3], %s230_s28, %s230_s28, %s231_s29  }
  0x13   :  { %s232_s7 = smov [#allocation5]   ;;  %s179_s11 = scalar_lea.hbm %s316_s1, 256 }
  0x14   :  { %s30_s8 = sshll.u32 %s232_s7, 4  ;;  %p180_p8 = scmp.ne.s32.totalorder %s316_s1, %s179_s11  ;;  %s31_s8 = int_to_ptr.vmem [resolvable:$true] %s30_s8 }
  0x15   :  { %p183_p9 = scmp.lt.u32.totalorder %s179_s11, %s316_s1 }
  0x17   :  { %p185_p10 = pnand %p183_p9, %p180_p8 }
  0x19   :  { %188 = shalt.err (!%p185_p10)
}
  0x1a   :  { %s189_s16 = scalar_lea.vmem %s31_s8, 256  ;;  %p194_p12 = scmp.lt.s32.totalorder %s31_s8, %s31_s8 }
  0x1b   :  { %p190_p11 = scmp.ne.s32.totalorder %s31_s8, %s189_s16  ;;  %p195_p13 = scmp.lt.s32.totalorder %s189_s16, %s189_s16 }
  0x1d   :  { %p196_p0 = por %p195_p13, %p194_p12 }
  0x1f   :  { %p197_p1 = pnand %p196_p0, %p190_p11 }
  0x21   :  { %200 = shalt.err (!%p197_p1)
}
  0x22   :  { %36 = dma.hbm_to_vmem [thread:$0]  %s316_s1, 256, %s31_s8, [#allocation6], %s230_s28, %s230_s28, %s231_s29  }
  0x23   :  { %223 = dma.done.wait [#allocation3], 256  }
  0x24   :  { %224 = vsyncadd [#allocation3], 4294967040 }
  0x25   :  { %225 = dma.done.wait [#allocation6], 256  }
  0x26   :  { %226 = vsyncadd [#allocation6], 4294967040  ;;  %v49_v0 = vld [vmem:[#allocation2] sm:$0xff]  ;;  %v51_v1 = vld [vmem:[#allocation5] sm:$0xff]  ;;  %vm64_vm0 = vcmask 261120   ;;  %vm118_vm1 = vcmask 257024  }
  0x27   :  { %v139_v2 = vld [vmem:[%s317_s2] ss:$0 sm:$0xff]  ;;  %v53_v3 = vadd.f32 %v51_v1, %v49_v0  ;;  %v50_v4 = vld [vmem:[#allocation2 + $0x8] sm:$0xff]  ;;  %v52_v5 = vld [vmem:[#allocation5 + $0x8] sm:$0xff]  ;;  %s233_s22 = smov [#allocation7]  }
  0x28   :  { %v54_v6 = vadd.f32 %v52_v5, %v50_v4  ;;  %v140_v28 = vld [vmem:[%s318_s3] ss:$0 sm:$0xff]  ;;  %s126_s23 = sshll.u32 %s233_s22, 4  ;;  %s127_s23 = int_to_ptr.vmem [resolvable:$true] %s126_s23 }
  0x29   :  { %v62_v7 = vadd.f32 %v139_v2, %v53_v3  ;;  %v141_v30 = vld [vmem:[%s319_s4] ss:$0 sm:$0xff]  ;;  %s201_s3 = scalar_lea.vmem %s127_s23, 128  ;;  %p206_p3 = scmp.lt.s32.totalorder %s127_s23, %s127_s23 }
  0x2a   :  { %v63_v8 = vadd.f32 %v139_v2, %v54_v6  ;;  %p202_p2 = scmp.ne.s32.totalorder %s127_s23, %s201_s3  ;;  %p207_p4 = scmp.lt.s32.totalorder %s201_s3, %s201_s3 }
  0x2b   :  { %v65_v9 = vsel %vm64_vm0, %v62_v7, 0.0 }
  0x2c   :  { %66 = vadd.xlane.f32.xlu0 %v65_v9  ;;  %v68_v10 = vsel %vm64_vm0, %v63_v8, 0.0  ;;  %p208_p5 = por %p207_p4, %p206_p3 }
  0x2e   :  { %p209_p6 = pnand %p208_p5, %p202_p2 }
  0x30   :  { %69 = vadd.xlane.f32.xlu0 %v68_v10 }
  0xb9   :  { %v67_v11 = vpop.xlane.xlu0 %66 }
  0xba   :  { %v72_v12 = vmul.f32 0.03125, %v67_v11 }
  0xbc   :  { %v74_v13 = vsub.f32 %v62_v7, %v72_v12 }
  0xbd   :  { %v70_v14 = vpop.xlane.xlu0 %69 }
  0xbe   :  { %v73_v15 = vmul.f32 0.03125, %v70_v14  ;;  %v76_v16 = vmul.f32 %v74_v13, %v74_v13 }
  0xc0   :  { %v75_v17 = vsub.f32 %v63_v8, %v73_v15  ;;  %v78_v18 = vsel %vm64_vm0, %v76_v16, 0.0 }
  0xc1   :  { %79 = vadd.xlane.f32.xlu1 %v78_v18 }
  0xc2   :  { %v77_v19 = vmul.f32 %v75_v17, %v75_v17 }
  0xc4   :  { %v81_v20 = vsel %vm64_vm0, %v77_v19, 0.0 }
  0xc5   :  { %82 = vadd.xlane.f32.xlu1 %v81_v20 }
 0x14e   :  { %v80_v21 = vpop.xlane.xlu1 %79 }
 0x14f   :  { %v84_v22 = vmul.f32 0.03125, %v80_v21 }
 0x151   :  { %v86_v23 = vadd.f32 1e-05, %v84_v22 }
 0x152   :  { %v83_v24 = vpop.xlane.xlu1 %82 }
 0x153   :  { %153 = vrsqrt.f32 %v86_v23  ;;  %v85_v25 = vmul.f32 0.03125, %v83_v24 }
 0x155   :  { %v87_v26 = vadd.f32 1e-05, %v85_v25 }
 0x157   :  { %155 = vrsqrt.f32 %v87_v26 }
 0x15d   :  { %v154_v27 = vpop.eup %153 }
 0x15e   :  { %v90_v29 = vmul.f32 %v154_v27, %v74_v13 }
 0x160   :  { %v99_v31 = vmul.f32 %v140_v28, %v90_v29 }
 0x161   :  { %v156_v32 = vpop.eup %155 }
 0x162   :  { %v91_v33 = vmul.f32 %v156_v32, %v75_v17  ;;  %v108_v34 = vadd.f32 %v141_v30, %v99_v31 }
 0x164   :  { %v100_v35 = vmul.f32 %v140_v28, %v91_v33  ;;  %v144_v36 = vpack.c.bf16 %v108_v34, %v108_v34 }
 0x166   :  { %v109_v37 = vadd.f32 %v141_v30, %v100_v35  ;;  %119 = vst.msk [vmem:[#allocation7] sm:$0xf] %vm118_vm1, %v144_v36 }
 0x168   :  { %v145_v38 = vpack.c.bf16 %v109_v37, %v109_v37 }
 0x16a   :  { %120 = vst.msk [vmem:[#allocation7 + $0x4] sm:$0xf] %vm118_vm1, %v145_v38 }
 0x16b   :  { %212 = shalt.err (!%p209_p6)
}
 0x16c   :  { %s213_s25 = scalar_lea.hbm %s320_s5, 128 }
 0x16d   :  { %p214_p7 = scmp.ne.s32.totalorder %s320_s5, %s213_s25  ;;  %p217_p8 = scmp.lt.u32.totalorder %s213_s25, %s320_s5 }
 0x16f   :  { %p219_p9 = pnand %p217_p8, %p214_p7 }
 0x171   :  { %222 = shalt.err (!%p219_p9)
}
 0x172   :  { %s234_s30 = smov 64   ;;  %s235_s6 = smov 4  }
 0x173   :  { %132 = dma.vmem_to_hbm [thread:$0]  %s127_s23, 128, %s320_s5, [#allocation4], %s234_s30, %s234_s30, %s235_s6  }
 0x174   :  { %227 = dma.done.wait [#allocation4], 128  }
 0x175   :  { %228 = vsyncadd [#allocation4], 4294967168 }
 0x176   :  { %136 = vsyncpa [#allocation3], 1 }
 0x177   :  { %137 = vsyncpa [#allocation6], 1 }
 0x178   :  { %138 = vsyncpa [#allocation4], 1 }

</bundles_post_ra>
